<compile_context>
chip_gen: v6e
topology: v6e:2x2x1
jax: 0.10.0
libtpu: 0.0.40
codegen_flags: <defaults>
</compile_context>

<pallas_src>
import math

import jax
import jax.numpy as jnp
import numpy as np
from jax import lax
from jax.experimental import pallas as pl
from jax.experimental.pallas import tpu as pltpu

H_MAX = 0.05   # same as ode_solve's h_max
UNROLL = 4     # Euler-step unroll factor inside the kernel


# ----------------------------------------------------------------------------
# Fully fused Pallas kernel: all segments + all Euler steps in one invocation
# ----------------------------------------------------------------------------
def _make_kernel(bs: int, dim: int, hidden: int, n_segs: int, matmul_dtype):
    def kernel(n_ref, h_ref, z0_ref, w1_ref, b1_ref, w2_ref, b2_ref, zs_ref):
        # Weights stay resident (in vregs / VMEM) for the whole trajectory.
        w1 = w1_ref[...].astype(matmul_dtype)
        w2 = w2_ref[...].astype(matmul_dtype)
        # Hoisted bias broadcasts (JAX does not CSE broadcast_in_dim).
        b1b = jnp.broadcast_to(b1_ref[...], (bs, hidden))
        b2b = jnp.broadcast_to(b2_ref[...], (bs, dim))

        def seg_body(seg, z):
            n = n_ref[seg]                      # int32 Euler step count (SMEM)
            # Hoist the step-size splat out of the Euler loop.
            hb = jnp.full((bs, dim), h_ref[seg], dtype=jnp.float32)

            def euler_step(zz):
                hid = jnp.tanh(
                    jnp.dot(zz.astype(matmul_dtype), w1,
                            preferred_element_type=jnp.float32) + b1b)
                f = jnp.dot(hid.astype(matmul_dtype), w2,
                            preferred_element_type=jnp.float32) + b2b
                return zz + hb * f              # axpy stays f32 (v5e-safe)

            # Single dynamic-trip-count loop; UNROLL predicated steps per
            # iteration (no separate remainder loop).
            n_chunks = pl.cdiv(n, UNROLL)

            def chunk_body(c, zz):
                base = c * UNROLL
                for u in range(UNROLL):         # unrolled at trace time
                    zz = jnp.where(base + u < n, euler_step(zz), zz)
                return zz

            z = lax.fori_loop(0, n_chunks, chunk_body, z)
            zs_ref[seg] = z                     # trajectory point at t[seg + 1]
            return z                            # carry z in vregs to next segment

        lax.fori_loop(0, n_segs, seg_body, z0_ref[...])

    return kernel


# ----------------------------------------------------------------------------
# NeuralODE.forward equivalent (jit-able; no host sync on t)
# ----------------------------------------------------------------------------
def neural_ode_forward(z0, params, t=None, return_whole_sequence=False,
                       matmul_dtype=jnp.float32):
    """Mirrors NeuralODE.forward / ODEAdjoint.forward (inference path)."""
    if t is None:
        t = jnp.array([0.0, 1.0], dtype=jnp.float32)
    t = jnp.asarray(t, dtype=jnp.float32)
    z0 = z0.astype(jnp.float32)

    w1, b1, w2, b2 = (p.astype(jnp.float32) for p in params)
    bs, dim = z0.shape
    hidden = w1.shape[1]
    time_len = t.shape[0]           # static (shape information)
    n_segs = time_len - 1

    # Edge case: a single time point -> trajectory is just z0.
    if n_segs == 0:
        return z0[None] if return_whole_sequence else z0

    # Per-segment step counts and step sizes (traced; matches ode_solve's
    # ceil(|t1-t0| / h_max) with f32 arithmetic).
    dt = t[1:] - t[:-1]                                         # (n_segs,)
    n_steps = jnp.ceil(jnp.abs(dt) / jnp.float32(H_MAX)).astype(jnp.int32)
    h = dt / jnp.maximum(n_steps, 1).astype(jnp.float32)

    kernel = _make_kernel(bs, dim, hidden, n_segs, matmul_dtype)

    # Advisory cost hint: the kernel has tiny I/O but runs a long serial
    # matmul->tanh->matmul chain.  (Static estimate; exact step count is data
    # dependent.)
    steps_est = n_segs * max(1, int(math.ceil(1.0 / H_MAX)))
    cost = pl.CostEstimate(
        flops=2 * bs * (dim * hidden + hidden * dim) * steps_est,
        transcendentals=bs * hidden * steps_est,
        bytes_accessed=4 * (z0.size + w1.size + b1.size + w2.size + b2.size
                            + n_segs * bs * dim + 2 * n_segs),
    )

    zs_tail = pl.pallas_call(
        kernel,
        out_shape=jax.ShapeDtypeStruct((n_segs, bs, dim), jnp.float32),
        in_specs=[
            pl.BlockSpec(memory_space=pltpu.MemorySpace.SMEM),   # n_steps
            pl.BlockSpec(memory_space=pltpu.MemorySpace.SMEM),   # h
            pl.BlockSpec(memory_space=pltpu.MemorySpace.VMEM),   # z0
            pl.BlockSpec(memory_space=pltpu.MemorySpace.VMEM),   # W1
            pl.BlockSpec(memory_space=pltpu.MemorySpace.VMEM),   # b1
            pl.BlockSpec(memory_space=pltpu.MemorySpace.VMEM),   # W2
            pl.BlockSpec(memory_space=pltpu.MemorySpace.VMEM),   # b2
        ],
        out_specs=pl.BlockSpec(memory_space=pltpu.MemorySpace.VMEM),
        cost_estimate=cost,
    )(n_steps, h, z0, w1, b1, w2, b2)

    if return_whole_sequence:
        # z[0] = z0, z[i+1] = state at t[i+1]  (same as ODEAdjoint.forward)
        return jnp.concatenate([z0[None], zs_tail], axis=0)
    return zs_tail[-1]              # z[-1], shape (bs, dim)


# ----------------------------------------------------------------------------
# Pure-JAX / numpy reference (for correctness check)
# ----------------------------------------------------------------------------
def _ref_f(z, params):
    w1, b1, w2, b2 = params
    return jnp.tanh(z @ w1 + b1) @ w2 + b2


def _ref_forward(z0, params, t):
    t_host = np.asarray(t, dtype=np.float32)
    z = z0.astype(jnp.float32)
    for i_t in range(t_host.shape[0] - 1):
        dt = np.float32(t_host[i_t + 1] - t_host[i_t])
        n = int(np.ceil(np.abs(dt) / np.float32(H_MAX)))
        h = np.float32(dt / np.float32(max(n, 1)))
        for _ in range(n):
            z = z + h * _ref_f(z, params)
    return z


# ----------------------------------------------------------------------------
# Driver
# ----------------------------------------------------------------------------
if __name__ == "__main__":
    bs, dim, hidden = 8, 16, 32

    key = jax.random.PRNGKey(0)
    k_z, k_w1, k_b1, k_w2, k_b2 = jax.random.split(key, 5)

    # Deterministic ODEF (MLP dynamics) parameters.
    w1 = jax.random.normal(k_w1, (dim, hidden), dtype=jnp.float32) * 0.1
    b1 = jax.random.normal(k_b1, (1, hidden), dtype=jnp.float32) * 0.01
    w2 = jax.random.normal(k_w2, (hidden, dim), dtype=jnp.float32) * 0.1
    b2 = jax.random.normal(k_b2, (1, dim), dtype=jnp.float32) * 0.01
    params = (w1, b1, w2, b2)

    z0 = jax.random.normal(k_z, (bs, dim), dtype=jnp.float32)
    # Two time segments to exercise the in-kernel segment loop + carried state.
    t = jnp.array([0.0, 0.5, 1.0], dtype=jnp.float32)

    fwd = jax.jit(neural_ode_forward,
                  static_argnames=("return_whole_sequence", "matmul_dtype"))

    out_last = jax.block_until_ready(fwd(z0, params, t))
    out_seq = jax.block_until_ready(fwd(z0, params, t, return_whole_sequence=True))

    ref_last = _ref_forward(z0, params, t)

    assert out_last.shape == (bs, dim), out_last.shape
    assert out_seq.shape == (t.shape[0], bs, dim), out_seq.shape
    np.testing.assert_allclose(np.asarray(out_seq[0]), np.asarray(z0),
                               rtol=0, atol=0)
    np.testing.assert_allclose(np.asarray(out_seq[-1]), np.asarray(out_last),
                               rtol=1e-6, atol=1e-6)
    np.testing.assert_allclose(np.asarray(out_last), np.asarray(ref_last),
                               rtol=1e-5, atol=1e-5)

    # Optional bf16 MXU-input fast path (v6e/v7x); elementwise stays f32.
    out_bf16 = jax.block_until_ready(fwd(z0, params, t,
                                         matmul_dtype=jnp.bfloat16))
    assert out_bf16.shape == (bs, dim)
    np.testing.assert_allclose(np.asarray(out_bf16), np.asarray(ref_last),
                               rtol=0, atol=5e-2)

    # TODO(synk): the adjoint backward pass (ODEAdjoint.backward) is training-
    # only autograd machinery and is not part of the forward kernel.
    print("KERNEL_OK")
</pallas_src>

<mosaic_0001>
module attributes {stable_mosaic.version = 11 : i64} {
  func.func @kernel(%arg0: memref<2xi32, #tpu.memory_space<smem>>, %arg1: memref<2xf32, #tpu.memory_space<smem>>, %arg2: memref<8x16xf32, #tpu.memory_space<vmem>>, %arg3: memref<16x32xf32, #tpu.memory_space<vmem>>, %arg4: memref<1x32xf32, #tpu.memory_space<vmem>>, %arg5: memref<32x16xf32, #tpu.memory_space<vmem>>, %arg6: memref<1x16xf32, #tpu.memory_space<vmem>>, %arg7: memref<2x8x16xf32, #tpu.memory_space<vmem>>) attributes {dimension_semantics = [], scalar_prefetch = 0 : i64, scratch_operands = 0 : i64, tpu.core_type = #tpu.core_type<tc>} {
    %c0 = arith.constant 0 : index
    %c0_0 = arith.constant 0 : index
    %0 = vector.load %arg3[%c0, %c0_0] : memref<16x32xf32, #tpu.memory_space<vmem>>, vector<16x32xf32>
    %c0_1 = arith.constant 0 : index
    %c0_2 = arith.constant 0 : index
    %1 = vector.load %arg5[%c0_1, %c0_2] : memref<32x16xf32, #tpu.memory_space<vmem>>, vector<32x16xf32>
    %c0_3 = arith.constant 0 : index
    %c0_4 = arith.constant 0 : index
    %2 = vector.load %arg4[%c0_3, %c0_4] : memref<1x32xf32, #tpu.memory_space<vmem>>, vector<1x32xf32>
    %3 = vector.shape_cast %2 : vector<1x32xf32> to vector<1x32xf32>
    %4 = vector.broadcast %3 : vector<1x32xf32> to vector<8x32xf32>
    %c0_5 = arith.constant 0 : index
    %c0_6 = arith.constant 0 : index
    %5 = vector.load %arg6[%c0_5, %c0_6] : memref<1x16xf32, #tpu.memory_space<vmem>>, vector<1x16xf32>
    %6 = vector.shape_cast %5 : vector<1x16xf32> to vector<1x16xf32>
    %7 = vector.broadcast %6 : vector<1x16xf32> to vector<8x16xf32>
    %c0_7 = arith.constant 0 : index
    %c0_8 = arith.constant 0 : index
    %8 = vector.load %arg2[%c0_7, %c0_8] : memref<8x16xf32, #tpu.memory_space<vmem>>, vector<8x16xf32>
    %c0_i32 = arith.constant 0 : i32
    %c2_i32 = arith.constant 2 : i32
    %9 = arith.addi %c0_i32, %c2_i32 : i32
    %c1_i32 = arith.constant 1 : i32
    %10 = scf.for %arg8 = %c0_i32 to %9 step %c1_i32 iter_args(%arg9 = %8) -> (vector<8x16xf32>)  : i32 {
      %11 = arith.index_cast %arg8 : i32 to index
      %12 = memref.load %arg0[%11] : memref<2xi32, #tpu.memory_space<smem>>
      %13 = arith.index_cast %arg8 : i32 to index
      %14 = memref.load %arg1[%13] : memref<2xf32, #tpu.memory_space<smem>>
      %15 = vector.broadcast %14 : f32 to vector<8x16xf32>
      %c3_i32 = arith.constant 3 : i32
      %16 = arith.addi %12, %c3_i32 : i32
      %c4_i32 = arith.constant 4 : i32
      %17 = arith.divsi %16, %c4_i32 : i32
      %c0_i32_10 = arith.constant 0 : i32
      %18 = arith.subi %17, %c0_i32_10 : i32
      %19 = arith.addi %c0_i32_10, %18 : i32
      %c1_i32_11 = arith.constant 1 : i32
      %20 = scf.for %arg10 = %c0_i32_10 to %19 step %c1_i32_11 iter_args(%arg11 = %arg9) -> (vector<8x16xf32>)  : i32 {
        %c4_i32_14 = arith.constant 4 : i32
        %25 = arith.muli %arg10, %c4_i32_14 : i32
        %c0_i32_15 = arith.constant 0 : i32
        %26 = arith.addi %25, %c0_i32_15 : i32
        %27 = arith.cmpi slt, %26, %12 : i32
        %cst = arith.constant dense<0.000000e+00> : vector<8x32xf32>
        %28 = tpu.matmul %arg11, %0, %cst {dimension_numbers = #tpu.dot_dimension_numbers<[1], [0], [0], [1], [0, 0, 1, 1], [], []>} : vector<8x16xf32>, vector<16x32xf32>, vector<8x32xf32> -> vector<8x32xf32>
        %29 = arith.addf %28, %4 : vector<8x32xf32>
        %30 = math.tanh %29 : vector<8x32xf32>
        %cst_16 = arith.constant dense<0.000000e+00> : vector<8x16xf32>
        %31 = tpu.matmul %30, %1, %cst_16 {dimension_numbers = #tpu.dot_dimension_numbers<[1], [0], [0], [1], [0, 0, 1, 1], [], []>} : vector<8x32xf32>, vector<32x16xf32>, vector<8x16xf32> -> vector<8x16xf32>
        %32 = arith.addf %31, %7 : vector<8x16xf32>
        %33 = arith.mulf %15, %32 : vector<8x16xf32>
        %34 = arith.addf %arg11, %33 : vector<8x16xf32>
        %35 = arith.select %27, %34, %arg11 : vector<8x16xf32>
        %c1_i32_17 = arith.constant 1 : i32
        %36 = arith.addi %25, %c1_i32_17 : i32
        %37 = arith.cmpi slt, %36, %12 : i32
        %cst_18 = arith.constant dense<0.000000e+00> : vector<8x32xf32>
        %38 = tpu.matmul %35, %0, %cst_18 {dimension_numbers = #tpu.dot_dimension_numbers<[1], [0], [0], [1], [0, 0, 1, 1], [], []>} : vector<8x16xf32>, vector<16x32xf32>, vector<8x32xf32> -> vector<8x32xf32>
        %39 = arith.addf %38, %4 : vector<8x32xf32>
        %40 = math.tanh %39 : vector<8x32xf32>
        %cst_19 = arith.constant dense<0.000000e+00> : vector<8x16xf32>
        %41 = tpu.matmul %40, %1, %cst_19 {dimension_numbers = #tpu.dot_dimension_numbers<[1], [0], [0], [1], [0, 0, 1, 1], [], []>} : vector<8x32xf32>, vector<32x16xf32>, vector<8x16xf32> -> vector<8x16xf32>
        %42 = arith.addf %41, %7 : vector<8x16xf32>
        %43 = arith.mulf %15, %42 : vector<8x16xf32>
        %44 = arith.addf %35, %43 : vector<8x16xf32>
        %45 = arith.select %37, %44, %35 : vector<8x16xf32>
        %c2_i32_20 = arith.constant 2 : i32
        %46 = arith.addi %25, %c2_i32_20 : i32
        %47 = arith.cmpi slt, %46, %12 : i32
        %cst_21 = arith.constant dense<0.000000e+00> : vector<8x32xf32>
        %48 = tpu.matmul %45, %0, %cst_21 {dimension_numbers = #tpu.dot_dimension_numbers<[1], [0], [0], [1], [0, 0, 1, 1], [], []>} : vector<8x16xf32>, vector<16x32xf32>, vector<8x32xf32> -> vector<8x32xf32>
        %49 = arith.addf %48, %4 : vector<8x32xf32>
        %50 = math.tanh %49 : vector<8x32xf32>
        %cst_22 = arith.constant dense<0.000000e+00> : vector<8x16xf32>
        %51 = tpu.matmul %50, %1, %cst_22 {dimension_numbers = #tpu.dot_dimension_numbers<[1], [0], [0], [1], [0, 0, 1, 1], [], []>} : vector<8x32xf32>, vector<32x16xf32>, vector<8x16xf32> -> vector<8x16xf32>
        %52 = arith.addf %51, %7 : vector<8x16xf32>
        %53 = arith.mulf %15, %52 : vector<8x16xf32>
        %54 = arith.addf %45, %53 : vector<8x16xf32>
        %55 = arith.select %47, %54, %45 : vector<8x16xf32>
        %c3_i32_23 = arith.constant 3 : i32
        %56 = arith.addi %25, %c3_i32_23 : i32
        %57 = arith.cmpi slt, %56, %12 : i32
        %cst_24 = arith.constant dense<0.000000e+00> : vector<8x32xf32>
        %58 = tpu.matmul %55, %0, %cst_24 {dimension_numbers = #tpu.dot_dimension_numbers<[1], [0], [0], [1], [0, 0, 1, 1], [], []>} : vector<8x16xf32>, vector<16x32xf32>, vector<8x32xf32> -> vector<8x32xf32>
        %59 = arith.addf %58, %4 : vector<8x32xf32>
        %60 = math.tanh %59 : vector<8x32xf32>
        %cst_25 = arith.constant dense<0.000000e+00> : vector<8x16xf32>
        %61 = tpu.matmul %60, %1, %cst_25 {dimension_numbers = #tpu.dot_dimension_numbers<[1], [0], [0], [1], [0, 0, 1, 1], [], []>} : vector<8x32xf32>, vector<32x16xf32>, vector<8x16xf32> -> vector<8x16xf32>
        %62 = arith.addf %61, %7 : vector<8x16xf32>
        %63 = arith.mulf %15, %62 : vector<8x16xf32>
        %64 = arith.addf %55, %63 : vector<8x16xf32>
        %65 = arith.select %57, %64, %55 : vector<8x16xf32>
        scf.yield %65 : vector<8x16xf32>
      }
      %21 = arith.index_cast %arg8 : i32 to index
      %c0_12 = arith.constant 0 : index
      %c0_13 = arith.constant 0 : index
      %22 = vector.load %arg7[%21, %c0_12, %c0_13] : memref<2x8x16xf32, #tpu.memory_space<vmem>>, vector<1x8x16xf32>
      %23 = vector.shape_cast %22 : vector<1x8x16xf32> to vector<8x16xf32>
      %24 = vector.shape_cast %20 : vector<8x16xf32> to vector<1x8x16xf32>
      tpu.vector_store %arg7[%21, %c0_12, %c0_13], %24 {strides = array<i32>} : memref<2x8x16xf32, #tpu.memory_space<vmem>>, vector<1x8x16xf32>,
      scf.yield %20 : vector<8x16xf32>
    }
    %c2_i32_9 = arith.constant 2 : i32
    return
  }
}

</mosaic_0001>

<bundles_post_ra>
// kernel: neural_ode_forward.1
= control target key start
LH: loop header
LB: loop body
LE: loop exit
PB: predicated region body
PF: predicated region fallthrough
CT: control target
= control target key end

     0   :  { %12 = vsyncpa [#allocation3], 0  ;;  %s1218_s0 = inlined_call_operand.vmem [shape: s32[2], index: 0, kind: input, shape index: {}]   ;;  %s1219_s1 = inlined_call_operand.vmem [shape: f32[2], index: 1, kind: input, shape index: {}]   ;;  %s1220_s2 = inlined_call_operand.vmem [shape: f32[8,16], index: 2, kind: input, shape index: {}]   ;;  %s1221_s3 = inlined_call_operand.vmem [shape: f32[16,32], index: 3, kind: input, shape index: {}]   ;;  %s1222_s4 = inlined_call_operand.vmem [shape: f32[1,32], index: 4, kind: input, shape index: {}]   ;;  %s1223_s5 = inlined_call_operand.vmem [shape: f32[32,16], index: 5, kind: input, shape index: {}]   ;;  %s1224_s6 = inlined_call_operand.vmem [shape: f32[1,16], index: 6, kind: input, shape index: {}]   ;;  %s1225_s7 = inlined_call_operand.vmem [shape: f32[2,8,16], index: 7, kind: output, shape index: {}]  }
   0x1   :  { %s20_s26 = sshll.u32 %s1218_s0, 4  ;;  %s21_s26 = int_to_ptr.vmem [resolvable:$true] %s20_s26 }
   0x2   :  { %13 = vsyncpa [#allocation5], 0  ;;  %s30_s29 = sshll.u32 %s1219_s1, 4  ;;  %s916_s30 = scalar_lea.vmem %s21_s26, 16  ;;  %s31_s29 = int_to_ptr.vmem [resolvable:$true] %s30_s29 }
   0x3   :  { %p917_p0 = scmp.ne.s32.totalorder %s21_s26, %s916_s30  ;;  %p921_p1 = scmp.lt.s32.totalorder %s21_s26, %s21_s26 }
   0x4   :  { %p922_p2 = scmp.lt.s32.totalorder %s916_s30, %s916_s30 }
   0x6   :  { %p923_p3 = por %p922_p2, %p921_p1 }
   0x8   :  { %p924_p4 = pnand %p923_p3, %p917_p0 }
   0xa   :  { %927 = shalt.err (!%p924_p4)
}
   0xb   :  { %s984_s8 = smov [#allocation2]   ;;  %s928_s9 = scalar_lea.vmem %s31_s29, 16 }
   0xc   :  { %23 = dma.vmem_to_smem %s21_s26, 16, %s984_s8, [#allocation3]  }
   0xd   :  { %p929_p5 = scmp.ne.s32.totalorder %s31_s29, %s928_s9  ;;  %p933_p6 = scmp.lt.s32.totalorder %s31_s29, %s31_s29 }
   0xe   :  { %p934_p7 = scmp.lt.s32.totalorder %s928_s9, %s928_s9 }
  0x10   :  { %p935_p8 = por %p934_p7, %p933_p6 }
  0x12   :  { %p936_p9 = pnand %p935_p8, %p929_p5 }
  0x14   :  { %939 = shalt.err (!%p936_p9)
}
  0x15   :  { %s985_s0 = smov [#allocation4]  }
  0x16   :  { %33 = dma.vmem_to_smem %s31_s29, 16, %s985_s0, [#allocation5]  }
  0x17   :  { %960 = dma.done.wait [#allocation3], 16  }
  0x18   :  { %961 = vsyncadd [#allocation3], 4294967280 }
  0x19   :  { %962 = dma.done.wait [#allocation5], 16  }
  0x1a   :  { %963 = vsyncadd [#allocation5], 4294967280 }
  0x1b   :  { %50 = sfence }
  0x1c   :  { %v1037_v0 = vld [vmem:[%s1221_s3] sm:$0xff]  ;;  %v1042_v1 = vld [vmem:[%s1221_s3 + $0x8] sm:$0xff]  ;;  %v1057_v4 = vld [vmem:[%s1223_s5 + $0x10] sm:$0xff]  ;;  %s1079_s26 = smov 0  }
  0x1d   :  { %v1047_v2 = vld [vmem:[%s1223_s5] sm:$0xff]  ;;  %v1052_v3 = vld [vmem:[%s1223_s5 + $0x8] sm:$0xff]  ;;  %v1062_v5 = vld [vmem:[%s1223_s5 + $0x18] sm:$0xff] }
  0x1e   :  { %v1067_v6 = vld [vmem:[%s1222_s4] ss:$0 sm:$0xff] }
  0x1f   :  { %v1072_v7 = vld [vmem:[%s1224_s6] ss:$0 sm:$0xff] }
  0x20   :  { %v71_v8 = vld [vmem:[%s1220_s2] sm:$0xff]  }
  0x21 LB: > { %s1086_s4 = sld [smem:[#allocation2 + %s970_s26]]  ;;  %v1226_v10 = vmov %v966_v8  ;;  %s970_s26 = sphi %s1079_s26, %s77_s26   ;;  %v966_v8 = vphi %v71_v8, %v1229_v8  }
  0x22   : > { %s80_s5 = sld [smem:[#allocation4 + %s970_s26]] }
  0x27   : > { %s82_s6 = sadd.s32 3, %s1086_s4 }
  0x28   : > { %v1090_v9 = vstv %s80_s5  ;;  %p83_p10 = scmp.lt.s32.totalorder %s82_s6, 0  ;;  %s84_s2 = ssub.s32 0, %s82_s6 }
  0x29   : > { %s748_s27 = smin.u32 %s84_s2, %s82_s6 }
  0x2a   : > { %s86_s28 = sshrl.u32 %s748_s27, 2 }
  0x2b   : > { %s87_s29 = ssub.s32 0, %s86_s28 }
  0x2c   : > { %s1231_s29 = smov (!%p83_p10, %s87_s29), %s86_s28 }
  0x2d   : > { %p749_p11 = scmp.le.s32.totalorder %s1231_s29, 0 }
  0x2e   : > { %s1099_s30 = smov (!%p749_p11), 0  }
  0x2f   : > { %733 = sbr.rel (%p749_p11) target bundleno = 1694 (0x69e), region = 65 }
  0x34 LB: >> { %v986_v11 = vmov 0.0   ;;  %vm987_vm0 = vmmov 0   ;;  %vm98_vm1 = vcmask 130048   ;;  %vm173_vm2 = vcmask 261120   ;;  %s1139_s8 = sshll.u32 %s978_s30, 2  ;;  %s92_s30 = sadd.s32 1, %s978_s30   ;;  %s978_s30 = sphi %s1099_s30, %s92_s30   ;;  %v974_v8 = vphi %v966_v8, %v1227_v8  }
  0x35   : >> { %792 = vmatprep.subr.mxu1 %v986_v11  ;;  %796 = vmatprep.mubr.msk.f32.mxu1 %vm987_vm0, %v986_v11  ;;  %p97_p12 = scmp.lt.s32.totalorder %s1139_s8, %s1086_s4  ;;  %s253_s0 = sadd.s32 1, %s1139_s8 }
  0x36   : >> { %793 = vmatpush3.msra.mxu1 %v1042_v1  ;;  %810 = vmatprep.subr.mxu0 %v986_v11  ;;  %p254_p13 = scmp.lt.s32.totalorder %s253_s0, %s1086_s4  ;;  %s408_s10 = sadd.s32 2, %s1139_s8 }
  0x37   : >> { %794 = vmatprep.subr.mxu1 %v986_v11  ;;  %811 = vmatpush3.msra.mxu0 %v1042_v1  ;;  %s249_s9 = scalar_select %p97_p12, 1, 0 }
  0x38   : >> { %795 = vmatpush3.msra.mxu1 %v1037_v0  ;;  %812 = vmatprep.subr.mxu0 %v986_v11  ;;  %s404_s1 = scalar_select %p254_p13, 1, 0 }
  0x39   : >> { %797 = vmatmul.mubr.msk.f32.vlgmr.msra.gmra.mxu1 %vm98_vm1, %v974_v8  ;;  %799 = vmatprep.subr.mxu1 %v986_v11  ;;  %v250_v18 = vstv %s249_s9  ;;  %p409_p0 = scmp.lt.s32.totalorder %s408_s10, %s1086_s4  ;;  %s563_s12 = sadd.s32 3, %s1139_s8 }
  0x3a   : >> { %800 = vmatpush3.msra.mxu1 %v1062_v5  ;;  %807 = vmatprep.mubr.msk.f32.mxu1 %vm987_vm0, %v986_v11  ;;  %vm251_vm3 = vcmp.eq.s32.totalorder %v250_v18, 1  ;;  %v405_v29 = vstv %s404_s1  ;;  %p564_p1 = scmp.lt.s32.totalorder %s563_s12, %s1086_s4  ;;  %p91_p2 = scmp.ge.s32.totalorder %s92_s30, %s1231_s29 }
  0x3b   : >> { %801 = vmatprep.subr.mxu1 %v986_v11  ;;  %813 = vmatpush3.msra.mxu0 %v1037_v0  ;;  %vm406_vm4 = vcmp.eq.s32.totalorder %v405_v29, 1  ;;  %s559_s11 = scalar_select %p409_p0, 1, 0 }
  0x3c   : >> { %802 = vmatpush3.msra.mxu1 %v1057_v4  ;;  %814 = vmatprep.mubr.msk.f32.mxu0 %vm987_vm0, %v986_v11  ;;  %s714_s13 = scalar_select %p564_p1, 1, 0 }
  0x3d   : >> { %803 = vmatprep.subr.mxu1 %v986_v11  ;;  %817 = vmatprep.subr.mxu0 %v986_v11  ;;  %v560_v40 = vstv %s559_s11 }
  0x3e   : >> { %804 = vmatpush3.msra.mxu1 %v1052_v3  ;;  %vm561_vm5 = vcmp.eq.s32.totalorder %v560_v40, 1  ;;  %v715_v51 = vstv %s714_s13 }
  0x3f   : >> { %805 = vmatprep.subr.mxu1 %v986_v11  ;;  %vm716_vm6 = vcmp.eq.s32.totalorder %v715_v51, 1 }
  0x40   : >> { %806 = vmatpush3.msra.mxu1 %v1047_v2 }
  0x41   : >> { %828 = vmatprep.subr.mxu1 %v986_v11 }
  0xf9   : >> { %v168_v12 = vpop.f32.mrf.mxu1 }
  0xfa   : >> { %v169_v13 = vadd.f32 %v1067_v6, %v168_v12 }
  0xfb   : >> { %v798_v14 = vpop.f32.mrf.mxu1 }
  0xfc   : >> { %908 = vtanh.f32 %v169_v13 }
 0x109   : >> { %v909_v15 = vpop.eup %908 }
 0x10a   : >> { %808 = vmatmul.mubr.msk.f32.vlgmr.msra.gmra.mxu1 %vm173_vm2, %v909_v15 }
 0x10b   : >> { %829 = vmatpush3.msra.mxu1 %v1042_v1  ;;  %832 = vmatprep.mubr.msk.f32.mxu1 %vm987_vm0, %v986_v11 }
 0x10c   : >> { %830 = vmatprep.subr.mxu1 %v986_v11 }
 0x10d   : >> { %831 = vmatpush3.msra.mxu1 %v1037_v0 }
 0x10e   : >> { %835 = vmatprep.subr.mxu1 %v986_v11 }
 0x1ca   : >> { %v243_v16 = vpop.f32.mrf.mxu1 }
 0x1cb   : >> { %v244_v17 = vadd.f32 %v1072_v7, %v243_v16 }
 0x1cc   : >> { %v809_v19 = vpop.f32.mrf.mxu1 }
 0x1cd   : >> { %v247_v20 = vmul.f32 %v244_v17, %v1090_v9 }
 0x1cf   : >> { %v248_v21 = vadd.f32 %v974_v8, %v247_v20 }
 0x1d1   : >> { %v252_v22 = vsel %vm251_vm3, %v248_v21, %v974_v8 }
 0x1d2   : >> { %815 = vmatmul.mubr.msk.f32.vlgmr.msra.gmra.mxu0 %vm98_vm1, %v252_v22 }
 0x1d3   : >> { %818 = vmatpush3.msra.mxu0 %v1062_v5  ;;  %825 = vmatprep.mubr.msk.f32.mxu0 %vm987_vm0, %v986_v11 }
 0x1d4   : >> { %819 = vmatprep.subr.mxu0 %v986_v11 }
 0x1d5   : >> { %820 = vmatpush3.msra.mxu0 %v1057_v4 }
 0x1d6   : >> { %821 = vmatprep.subr.mxu0 %v986_v11 }
 0x1d7   : >> { %822 = vmatpush3.msra.mxu0 %v1052_v3 }
 0x1d8   : >> { %823 = vmatprep.subr.mxu0 %v986_v11 }
 0x1d9   : >> { %824 = vmatpush3.msra.mxu0 %v1047_v2 }
 0x1da   : >> { %846 = vmatprep.subr.mxu0 %v986_v11 }
 0x292   : >> { %v324_v23 = vpop.f32.mrf.mxu0 }
 0x293   : >> { %v325_v24 = vadd.f32 %v1067_v6, %v324_v23 }
 0x294   : >> { %v816_v25 = vpop.f32.mrf.mxu0 }
 0x295   : >> { %910 = vtanh.f32 %v325_v24 }
 0x2a2   : >> { %v911_v26 = vpop.eup %910 }
 0x2a3   : >> { %826 = vmatmul.mubr.msk.f32.vlgmr.msra.gmra.mxu0 %vm173_vm2, %v911_v26 }
 0x2a4   : >> { %847 = vmatpush3.msra.mxu0 %v1042_v1  ;;  %850 = vmatprep.mubr.msk.f32.mxu0 %vm987_vm0, %v986_v11 }
 0x2a5   : >> { %848 = vmatprep.subr.mxu0 %v986_v11 }
 0x2a6   : >> { %849 = vmatpush3.msra.mxu0 %v1037_v0 }
 0x2a7   : >> { %853 = vmatprep.subr.mxu0 %v986_v11 }
 0x363   : >> { %v398_v27 = vpop.f32.mrf.mxu0 }
 0x364   : >> { %v399_v28 = vadd.f32 %v1072_v7, %v398_v27 }
 0x365   : >> { %v827_v30 = vpop.f32.mrf.mxu0 }
 0x366   : >> { %v402_v31 = vmul.f32 %v399_v28, %v1090_v9 }
 0x368   : >> { %v403_v32 = vadd.f32 %v402_v31, %v252_v22 }
 0x36a   : >> { %v407_v33 = vsel %vm406_vm4, %v403_v32, %v252_v22 }
 0x36b   : >> { %833 = vmatmul.mubr.msk.f32.vlgmr.msra.gmra.mxu1 %vm98_vm1, %v407_v33 }
 0x36c   : >> { %836 = vmatpush3.msra.mxu1 %v1062_v5  ;;  %843 = vmatprep.mubr.msk.f32.mxu1 %vm987_vm0, %v986_v11 }
 0x36d   : >> { %837 = vmatprep.subr.mxu1 %v986_v11 }
 0x36e   : >> { %838 = vmatpush3.msra.mxu1 %v1057_v4 }
 0x36f   : >> { %839 = vmatprep.subr.mxu1 %v986_v11 }
 0x370   : >> { %840 = vmatpush3.msra.mxu1 %v1052_v3 }
 0x371   : >> { %841 = vmatprep.subr.mxu1 %v986_v11 }
 0x372   : >> { %842 = vmatpush3.msra.mxu1 %v1047_v2 }
 0x42b   : >> { %v479_v34 = vpop.f32.mrf.mxu1 }
 0x42c   : >> { %v480_v35 = vadd.f32 %v1067_v6, %v479_v34 }
 0x42d   : >> { %v834_v36 = vpop.f32.mrf.mxu1 }
 0x42e   : >> { %912 = vtanh.f32 %v480_v35 }
 0x43b   : >> { %v913_v37 = vpop.eup %912 }
 0x43c   : >> { %844 = vmatmul.mubr.msk.f32.vlgmr.msra.gmra.mxu1 %vm173_vm2, %v913_v37 }
 0x4fc   : >> { %v553_v38 = vpop.f32.mrf.mxu1 }
 0x4fd   : >> { %v554_v39 = vadd.f32 %v1072_v7, %v553_v38 }
 0x4fe   : >> { %v845_v41 = vpop.f32.mrf.mxu1 }
 0x4ff   : >> { %v557_v42 = vmul.f32 %v554_v39, %v1090_v9 }
 0x501   : >> { %v558_v43 = vadd.f32 %v557_v42, %v407_v33 }
 0x503   : >> { %v562_v44 = vsel %vm561_vm5, %v558_v43, %v407_v33 }
 0x504   : >> { %851 = vmatmul.mubr.msk.f32.vlgmr.msra.gmra.mxu0 %vm98_vm1, %v562_v44 }
 0x505   : >> { %854 = vmatpush3.msra.mxu0 %v1062_v5  ;;  %861 = vmatprep.mubr.msk.f32.mxu0 %vm987_vm0, %v986_v11 }
 0x506   : >> { %855 = vmatprep.subr.mxu0 %v986_v11 }
 0x507   : >> { %856 = vmatpush3.msra.mxu0 %v1057_v4 }
 0x508   : >> { %857 = vmatprep.subr.mxu0 %v986_v11 }
 0x509   : >> { %858 = vmatpush3.msra.mxu0 %v1052_v3 }
 0x50a   : >> { %859 = vmatprep.subr.mxu0 %v986_v11 }
 0x50b   : >> { %860 = vmatpush3.msra.mxu0 %v1047_v2 }
 0x5c4   : >> { %v634_v45 = vpop.f32.mrf.mxu0 }
 0x5c5   : >> { %v635_v46 = vadd.f32 %v1067_v6, %v634_v45 }
 0x5c6   : >> { %v852_v47 = vpop.f32.mrf.mxu0 }
 0x5c7   : >> { %914 = vtanh.f32 %v635_v46 }
 0x5d4   : >> { %v915_v48 = vpop.eup %914 }
 0x5d5   : >> { %862 = vmatmul.mubr.msk.f32.vlgmr.msra.gmra.mxu0 %vm173_vm2, %v915_v48 }
 0x695   : >> { %v708_v49 = vpop.f32.mrf.mxu0 }
 0x696   : >> { %v709_v50 = vadd.f32 %v1072_v7, %v708_v49 }
 0x697   : >> { %v863_v52 = vpop.f32.mrf.mxu0 }
 0x698   : >> { %v712_v53 = vmul.f32 %v709_v50, %v1090_v9 }
 0x699   : > { %94 = sbr.rel (!%p91_p2) target bundleno = 52 (0x34), region = 71 }
 0x69a   : >> { %v713_v54 = vadd.f32 %v712_v53, %v562_v44 }
 0x69c   : >> { %v717_v55 = vsel %vm716_vm6, %v713_v54, %v562_v44  }
 0x69d   : >> { %v1227_v8 = vmov %v717_v55  ;;  %v1228_v10 = vmov (%p91_p2), %v717_v55 }
 0x69e PF: > { %s759_s14 = sshll.u32 %s970_s26, 3  ;;  %vm720_vm7 = vcmask 130048   ;;  %s77_s26 = sadd.s32 1, %s970_s26   ;;  %v1229_v8 = vmov %v982_v10  ;;  %v982_v10 = vphi %v1226_v10, %v1228_v10  }
 0x69f   : > { %s719_s17 = scalar_lea.vmem %s1225_s7, %s759_s14  ;;  %p74_p3 = scmp.ge.s32.totalorder %s77_s26, 2  }
 0x6a0   : > { %721 = vst.msk [vmem:[%s719_s17] sm:$0xff] %vm720_vm7, %v982_v10 }
 0x6a1   :  { %76 = sbr.rel (!%p74_p3) target bundleno = 33 (0x21), region = 82 }
 0x6a6   :  { %726 = vsyncpa [#allocation3], 1 }
 0x6a7   :  { %727 = vsyncpa [#allocation5], 1 }

</bundles_post_ra>
